<compile_context>
chip_gen: v7x
topology: tpu7x:2x2x1
jax: 0.10.0
libtpu: 0.0.40
codegen_flags: <defaults>
</compile_context>

<pallas_src>
import jax
import jax.numpy as jnp
from jax.experimental import pallas as pl
from jax.experimental.pallas import tpu as pltpu

HIDDEN_STRUCTURE = [128, 128, 64, 32]
NUM_CLASSES = 4
CLS_PAD = 8                      # output rows, padded to the sublane granule
N_HIDDEN = len(HIDDEN_STRUCTURE)
LANE = 128
BN_EPS = 1e-5
NEG_INF = -1e30


# ---------------------------------------------------------------------------
# Kernel
# ---------------------------------------------------------------------------
def full_model_kernel(x_ref, w_ref, v_ref, o_ref):
    """x_ref: (B, in_dim) bf16, w_ref: (5,128,128) bf16, v_ref: (13,128) f32,
    o_ref: (CLS_PAD, B) f32 (transposed, class-major)."""
    batch = x_ref.shape[0]
    in_dim = x_ref.shape[1]
    inv_b = 1.0 / batch

    def bn_relu(h, i):
        gamma = v_ref[3 * i + 1 : 3 * i + 2, :]
        beta = v_ref[3 * i + 2 : 3 * i + 3, :]
        # Single-pass training-mode stats (biased variance), clamped against
        # f32 cancellation so rsqrt never sees a negative argument.
        s1 = jnp.sum(h, axis=0, keepdims=True)
        s2 = jnp.sum(h * h, axis=0, keepdims=True)
        mean = s1 * inv_b
        var = jnp.maximum(s2 * inv_b - mean * mean, 0.0)
        h = (h - mean) * jax.lax.rsqrt(var + BN_EPS)
        # scale/shift + ReLU  (padded lanes: 0*gamma + 0 -> stay exactly 0)
        return jnp.maximum(h * gamma + beta, 0.0)

    # Layer 0: native-width x against the top `in_dim` rows of the padded weight.
    w0 = w_ref[0][:in_dim, :]                                   # (in_dim, 128) bf16
    h = jnp.dot(x_ref[...], w0, preferred_element_type=jnp.float32) + v_ref[0:1, :]
    h = bn_relu(h, 0)

    for i in range(1, N_HIDDEN):
        w = w_ref[i]                                            # (128, 128) bf16
        b = v_ref[3 * i : 3 * i + 1, :]                         # (1, 128) f32
        h = jnp.dot(h.astype(jnp.bfloat16), w, preferred_element_type=jnp.float32) + b
        h = bn_relu(h, i)

    # Final Linear (output lane-padded to 128; padded logits = -1e30 via fc_b pads)
    fc_w = w_ref[N_HIDDEN]
    fc_b = v_ref[3 * N_HIDDEN : 3 * N_HIDDEN + 1, :]
    logits = jnp.dot(h.astype(jnp.bfloat16), fc_w, preferred_element_type=jnp.float32) + fc_b

    # Softmax over the class axis; padded columns underflow to exp(.) == 0.
    m = jnp.max(logits, axis=-1, keepdims=True)
    e = jnp.exp(logits - m)
    s = jnp.sum(e, axis=-1, keepdims=True)
    p = e * pl.reciprocal(s, approx=False)                      # exact normalization

    # Transposed, class-major store: only CLS_PAD * B f32 ever leave VMEM.
    o_ref[...] = jnp.transpose(p)[: o_ref.shape[0], :]


# ---------------------------------------------------------------------------
# Parameter init / packing
# ---------------------------------------------------------------------------
def init_params(key, input_shape, hidden_structure=HIDDEN_STRUCTURE):
    """Deterministic init mimicking PyTorch defaults (uniform +- 1/sqrt(fan_in))."""
    params = {"hidden": []}
    fan_in = input_shape
    for h in hidden_structure:
        key, kw, kb = jax.random.split(key, 3)
        bound = 1.0 / jnp.sqrt(fan_in)
        w = jax.random.uniform(kw, (fan_in, h), jnp.float32, -bound, bound)  # stored (in, out)
        b = jax.random.uniform(kb, (1, h), jnp.float32, -bound, bound)
        gamma = jnp.ones((1, h), jnp.float32)   # BatchNorm1d weight init
        beta = jnp.zeros((1, h), jnp.float32)   # BatchNorm1d bias init
        params["hidden"].append((w, b, gamma, beta))
        fan_in = h
    key, kw, kb = jax.random.split(key, 3)
    bound = 1.0 / jnp.sqrt(fan_in)
    params["fc_w"] = jax.random.uniform(kw, (fan_in, NUM_CLASSES), jnp.float32, -bound, bound)
    params["fc_b"] = jax.random.uniform(kb, (1, NUM_CLASSES), jnp.float32, -bound, bound)
    return params


def _pad_cols(a, width, value=0.0):
    pad = width - a.shape[-1]
    if pad == 0:
        return a
    return jnp.pad(a, [(0, 0)] * (a.ndim - 1) + [(0, pad)], constant_values=value)


def _pad_rows(a, height, value=0.0):
    pad = height - a.shape[0]
    if pad == 0:
        return a
    return jnp.pad(a, [(0, pad)] + [(0, 0)] * (a.ndim - 1), constant_values=value)


def pack_params(params):
    """Pack all parameters into two lane-dense slabs (done once, outside the hot path)."""
    ws, vecs = [], []
    for (w, b, g, be) in params["hidden"]:
        ws.append(_pad_rows(_pad_cols(w, LANE), LANE).astype(jnp.bfloat16))  # zero pads
        vecs.append(_pad_cols(b, LANE, 0.0))      # bias pad 0  -> padded lanes stay 0
        vecs.append(_pad_cols(g, LANE, 1.0))      # gamma pad value irrelevant (x_hat pad == 0)
        vecs.append(_pad_cols(be, LANE, 0.0))     # beta pad 0
    ws.append(_pad_rows(_pad_cols(params["fc_w"], LANE), LANE).astype(jnp.bfloat16))
    vecs.append(_pad_cols(params["fc_b"], LANE, NEG_INF))  # padded logits -> -inf under softmax

    w_slab = jnp.stack(ws, axis=0)                 # (5, 128, 128) bf16
    vec_slab = jnp.concatenate(vecs, axis=0)       # (13, 128) f32
    return w_slab, vec_slab.astype(jnp.float32)


# ---------------------------------------------------------------------------
# Wrapper
# ---------------------------------------------------------------------------
def full_model_forward(x, w_slab, vec_slab, num_classes=NUM_CLASSES):
    batch, in_dim = x.shape
    assert in_dim <= LANE, "kernel assumes input feature dim <= 128"
    x_bf16 = x.astype(jnp.bfloat16)   # native shape, halved input HBM bytes

    cost = pl.CostEstimate(
        flops=2 * batch * (in_dim + (N_HIDDEN) * LANE) * LANE,
        transcendentals=(N_HIDDEN * LANE) + batch * (LANE + 1),
        bytes_accessed=(x_bf16.size * 2 + w_slab.size * 2 + vec_slab.size * 4
                        + CLS_PAD * batch * 4),
    )

    out_t = pl.pallas_call(
        full_model_kernel,
        out_shape=jax.ShapeDtypeStruct((CLS_PAD, batch), jnp.float32),
        in_specs=[pl.BlockSpec(memory_space=pltpu.MemorySpace.VMEM)] * 3,
        out_specs=pl.BlockSpec(memory_space=pltpu.MemorySpace.VMEM),
        compiler_params=pltpu.CompilerParams(vmem_limit_bytes=32 * 1024 * 1024),
        cost_estimate=cost,
    )(x_bf16, w_slab, vec_slab)

    return jnp.transpose(out_t[:num_classes, :])   # (B, num_classes)


# ---------------------------------------------------------------------------
# Pure-JAX reference (f32 everywhere, mirrors PyTorch forward)
# ---------------------------------------------------------------------------
def reference_forward(x, params):
    h = x.astype(jnp.float32)
    for (w, b, g, be) in params["hidden"]:
        h = h @ w + b
        mean = jnp.mean(h, axis=0, keepdims=True)
        var = jnp.mean((h - mean) ** 2, axis=0, keepdims=True)
        h = jnp.maximum((h - mean) * jax.lax.rsqrt(var + BN_EPS) * g + be, 0.0)
    logits = h @ params["fc_w"] + params["fc_b"]
    return jax.nn.softmax(logits, axis=-1)


if __name__ == "__main__":
    key = jax.random.PRNGKey(0)
    key, kx, kp = jax.random.split(key, 3)

    batch = 8
    input_shape = 32  # feature dim of transferred embeddings + external features
    x = jax.random.normal(kx, (batch, input_shape), jnp.float32)

    params = init_params(kp, input_shape)
    w_slab, vec_slab = pack_params(params)

    out = full_model_forward(x, w_slab, vec_slab)
    out = jax.block_until_ready(out)

    assert out.shape == (batch, NUM_CLASSES)
    # softmax rows sum to 1 (exact reciprocal -> tight tolerance)
    assert bool(jnp.allclose(jnp.sum(out, axis=-1), 1.0, atol=1e-3))
    # value check vs full-f32 reference (tolerance covers bf16 MXU operands / bf16 x)
    ref = reference_forward(x, params)
    assert bool(jnp.allclose(out, ref, atol=3e-2)), float(jnp.max(jnp.abs(out - ref)))
    print("KERNEL_OK")
</pallas_src>

<mosaic_0001>
module attributes {stable_mosaic.version = 11 : i64} {
  func.func @full_model_kernel(%arg0: memref<8x32xbf16, #tpu.memory_space<vmem>>, %arg1: memref<5x128x128xbf16, #tpu.memory_space<vmem>>, %arg2: memref<13x128xf32, #tpu.memory_space<vmem>>, %arg3: memref<8x8xf32, #tpu.memory_space<vmem>>) attributes {dimension_semantics = [], scalar_prefetch = 0 : i64, scratch_operands = 0 : i64, tpu.core_type = #tpu.core_type<tc>} {
    %c0 = arith.constant 0 : index
    %c0_0 = arith.constant 0 : index
    %c0_1 = arith.constant 0 : index
    %0 = vector.load %arg1[%c0, %c0_0, %c0_1] : memref<5x128x128xbf16, #tpu.memory_space<vmem>>, vector<1x128x128xbf16>
    %1 = vector.shape_cast %0 : vector<1x128x128xbf16> to vector<128x128xbf16>
    %2 = vector.extract_strided_slice %1 {offsets = [0, 0], sizes = [32, 128], strides = [1, 1]} : vector<128x128xbf16> to vector<32x128xbf16>
    %c0_2 = arith.constant 0 : index
    %c0_3 = arith.constant 0 : index
    %3 = vector.load %arg0[%c0_2, %c0_3] : memref<8x32xbf16, #tpu.memory_space<vmem>>, vector<8x32xbf16>
    %cst = arith.constant dense<0.000000e+00> : vector<8x128xf32>
    %4 = tpu.matmul %3, %2, %cst {dimension_numbers = #tpu.dot_dimension_numbers<[1], [0], [0], [1], [0, 0, 1, 1], [], []>} : vector<8x32xbf16>, vector<32x128xbf16>, vector<8x128xf32> -> vector<8x128xf32>
    %c0_4 = arith.constant 0 : index
    %c0_5 = arith.constant 0 : index
    %5 = vector.load %arg2[%c0_4, %c0_5] : memref<13x128xf32, #tpu.memory_space<vmem>>, vector<1x128xf32>
    %6 = vector.broadcast %5 : vector<1x128xf32> to vector<8x128xf32>
    %7 = arith.addf %4, %6 : vector<8x128xf32>
    %c1 = arith.constant 1 : index
    %c0_6 = arith.constant 0 : index
    %8 = vector.load %arg2[%c1, %c0_6] : memref<13x128xf32, #tpu.memory_space<vmem>>, vector<1x128xf32>
    %c2 = arith.constant 2 : index
    %c0_7 = arith.constant 0 : index
    %9 = vector.load %arg2[%c2, %c0_7] : memref<13x128xf32, #tpu.memory_space<vmem>>, vector<1x128xf32>
    %cst_8 = arith.constant dense<0.000000e+00> : vector<128xf32>
    %10 = vector.multi_reduction <add>, %7, %cst_8 [0] : vector<8x128xf32> to vector<128xf32>
    %11 = vector.shape_cast %10 : vector<128xf32> to vector<1x128xf32>
    %12 = arith.mulf %7, %7 : vector<8x128xf32>
    %cst_9 = arith.constant dense<0.000000e+00> : vector<128xf32>
    %13 = vector.multi_reduction <add>, %12, %cst_9 [0] : vector<8x128xf32> to vector<128xf32>
    %14 = vector.shape_cast %13 : vector<128xf32> to vector<1x128xf32>
    %cst_10 = arith.constant 1.250000e-01 : f32
    %15 = vector.broadcast %cst_10 : f32 to vector<1x128xf32>
    %16 = arith.mulf %11, %15 : vector<1x128xf32>
    %cst_11 = arith.constant 1.250000e-01 : f32
    %17 = vector.broadcast %cst_11 : f32 to vector<1x128xf32>
    %18 = arith.mulf %14, %17 : vector<1x128xf32>
    %19 = arith.mulf %16, %16 : vector<1x128xf32>
    %20 = arith.subf %18, %19 : vector<1x128xf32>
    %cst_12 = arith.constant 0.000000e+00 : f32
    %21 = vector.broadcast %cst_12 : f32 to vector<1x128xf32>
    %22 = arith.maximumf %20, %21 : vector<1x128xf32>
    %23 = vector.broadcast %16 : vector<1x128xf32> to vector<8x128xf32>
    %24 = arith.subf %7, %23 : vector<8x128xf32>
    %cst_13 = arith.constant 9.99999974E-6 : f32
    %25 = vector.broadcast %cst_13 : f32 to vector<1x128xf32>
    %26 = arith.addf %22, %25 : vector<1x128xf32>
    %27 = math.rsqrt %26 : vector<1x128xf32>
    %28 = vector.broadcast %27 : vector<1x128xf32> to vector<8x128xf32>
    %29 = arith.mulf %24, %28 : vector<8x128xf32>
    %30 = vector.broadcast %8 : vector<1x128xf32> to vector<8x128xf32>
    %31 = arith.mulf %29, %30 : vector<8x128xf32>
    %32 = vector.broadcast %9 : vector<1x128xf32> to vector<8x128xf32>
    %33 = arith.addf %31, %32 : vector<8x128xf32>
    %cst_14 = arith.constant 0.000000e+00 : f32
    %34 = vector.broadcast %cst_14 : f32 to vector<8x128xf32>
    %35 = arith.maximumf %33, %34 : vector<8x128xf32>
    %c1_15 = arith.constant 1 : index
    %c0_16 = arith.constant 0 : index
    %c0_17 = arith.constant 0 : index
    %36 = vector.load %arg1[%c1_15, %c0_16, %c0_17] : memref<5x128x128xbf16, #tpu.memory_space<vmem>>, vector<1x128x128xbf16>
    %37 = vector.shape_cast %36 : vector<1x128x128xbf16> to vector<128x128xbf16>
    %c3 = arith.constant 3 : index
    %c0_18 = arith.constant 0 : index
    %38 = vector.load %arg2[%c3, %c0_18] : memref<13x128xf32, #tpu.memory_space<vmem>>, vector<1x128xf32>
    %39 = arith.truncf %35 : vector<8x128xf32> to vector<8x128xbf16>
    %cst_19 = arith.constant dense<0.000000e+00> : vector<8x128xf32>
    %40 = tpu.matmul %39, %37, %cst_19 {dimension_numbers = #tpu.dot_dimension_numbers<[1], [0], [0], [1], [0, 0, 1, 1], [], []>} : vector<8x128xbf16>, vector<128x128xbf16>, vector<8x128xf32> -> vector<8x128xf32>
    %41 = vector.broadcast %38 : vector<1x128xf32> to vector<8x128xf32>
    %42 = arith.addf %40, %41 : vector<8x128xf32>
    %c4 = arith.constant 4 : index
    %c0_20 = arith.constant 0 : index
    %43 = vector.load %arg2[%c4, %c0_20] : memref<13x128xf32, #tpu.memory_space<vmem>>, vector<1x128xf32>
    %c5 = arith.constant 5 : index
    %c0_21 = arith.constant 0 : index
    %44 = vector.load %arg2[%c5, %c0_21] : memref<13x128xf32, #tpu.memory_space<vmem>>, vector<1x128xf32>
    %cst_22 = arith.constant dense<0.000000e+00> : vector<128xf32>
    %45 = vector.multi_reduction <add>, %42, %cst_22 [0] : vector<8x128xf32> to vector<128xf32>
    %46 = vector.shape_cast %45 : vector<128xf32> to vector<1x128xf32>
    %47 = arith.mulf %42, %42 : vector<8x128xf32>
    %cst_23 = arith.constant dense<0.000000e+00> : vector<128xf32>
    %48 = vector.multi_reduction <add>, %47, %cst_23 [0] : vector<8x128xf32> to vector<128xf32>
    %49 = vector.shape_cast %48 : vector<128xf32> to vector<1x128xf32>
    %cst_24 = arith.constant 1.250000e-01 : f32
    %50 = vector.broadcast %cst_24 : f32 to vector<1x128xf32>
    %51 = arith.mulf %46, %50 : vector<1x128xf32>
    %cst_25 = arith.constant 1.250000e-01 : f32
    %52 = vector.broadcast %cst_25 : f32 to vector<1x128xf32>
    %53 = arith.mulf %49, %52 : vector<1x128xf32>
    %54 = arith.mulf %51, %51 : vector<1x128xf32>
    %55 = arith.subf %53, %54 : vector<1x128xf32>
    %cst_26 = arith.constant 0.000000e+00 : f32
    %56 = vector.broadcast %cst_26 : f32 to vector<1x128xf32>
    %57 = arith.maximumf %55, %56 : vector<1x128xf32>
    %58 = vector.broadcast %51 : vector<1x128xf32> to vector<8x128xf32>
    %59 = arith.subf %42, %58 : vector<8x128xf32>
    %cst_27 = arith.constant 9.99999974E-6 : f32
    %60 = vector.broadcast %cst_27 : f32 to vector<1x128xf32>
    %61 = arith.addf %57, %60 : vector<1x128xf32>
    %62 = math.rsqrt %61 : vector<1x128xf32>
    %63 = vector.broadcast %62 : vector<1x128xf32> to vector<8x128xf32>
    %64 = arith.mulf %59, %63 : vector<8x128xf32>
    %65 = vector.broadcast %43 : vector<1x128xf32> to vector<8x128xf32>
    %66 = arith.mulf %64, %65 : vector<8x128xf32>
    %67 = vector.broadcast %44 : vector<1x128xf32> to vector<8x128xf32>
    %68 = arith.addf %66, %67 : vector<8x128xf32>
    %cst_28 = arith.constant 0.000000e+00 : f32
    %69 = vector.broadcast %cst_28 : f32 to vector<8x128xf32>
    %70 = arith.maximumf %68, %69 : vector<8x128xf32>
    %c2_29 = arith.constant 2 : index
    %c0_30 = arith.constant 0 : index
    %c0_31 = arith.constant 0 : index
    %71 = vector.load %arg1[%c2_29, %c0_30, %c0_31] : memref<5x128x128xbf16, #tpu.memory_space<vmem>>, vector<1x128x128xbf16>
    %72 = vector.shape_cast %71 : vector<1x128x128xbf16> to vector<128x128xbf16>
    %c6 = arith.constant 6 : index
    %c0_32 = arith.constant 0 : index
    %73 = vector.load %arg2[%c6, %c0_32] : memref<13x128xf32, #tpu.memory_space<vmem>>, vector<1x128xf32>
    %74 = arith.truncf %70 : vector<8x128xf32> to vector<8x128xbf16>
    %cst_33 = arith.constant dense<0.000000e+00> : vector<8x128xf32>
    %75 = tpu.matmul %74, %72, %cst_33 {dimension_numbers = #tpu.dot_dimension_numbers<[1], [0], [0], [1], [0, 0, 1, 1], [], []>} : vector<8x128xbf16>, vector<128x128xbf16>, vector<8x128xf32> -> vector<8x128xf32>
    %76 = vector.broadcast %73 : vector<1x128xf32> to vector<8x128xf32>
    %77 = arith.addf %75, %76 : vector<8x128xf32>
    %c7 = arith.constant 7 : index
    %c0_34 = arith.constant 0 : index
    %78 = vector.load %arg2[%c7, %c0_34] : memref<13x128xf32, #tpu.memory_space<vmem>>, vector<1x128xf32>
    %c8 = arith.constant 8 : index
    %c0_35 = arith.constant 0 : index
    %79 = vector.load %arg2[%c8, %c0_35] : memref<13x128xf32, #tpu.memory_space<vmem>>, vector<1x128xf32>
    %cst_36 = arith.constant dense<0.000000e+00> : vector<128xf32>
    %80 = vector.multi_reduction <add>, %77, %cst_36 [0] : vector<8x128xf32> to vector<128xf32>
    %81 = vector.shape_cast %80 : vector<128xf32> to vector<1x128xf32>
    %82 = arith.mulf %77, %77 : vector<8x128xf32>
    %cst_37 = arith.constant dense<0.000000e+00> : vector<128xf32>
    %83 = vector.multi_reduction <add>, %82, %cst_37 [0] : vector<8x128xf32> to vector<128xf32>
    %84 = vector.shape_cast %83 : vector<128xf32> to vector<1x128xf32>
    %cst_38 = arith.constant 1.250000e-01 : f32
    %85 = vector.broadcast %cst_38 : f32 to vector<1x128xf32>
    %86 = arith.mulf %81, %85 : vector<1x128xf32>
    %cst_39 = arith.constant 1.250000e-01 : f32
    %87 = vector.broadcast %cst_39 : f32 to vector<1x128xf32>
    %88 = arith.mulf %84, %87 : vector<1x128xf32>
    %89 = arith.mulf %86, %86 : vector<1x128xf32>
    %90 = arith.subf %88, %89 : vector<1x128xf32>
    %cst_40 = arith.constant 0.000000e+00 : f32
    %91 = vector.broadcast %cst_40 : f32 to vector<1x128xf32>
    %92 = arith.maximumf %90, %91 : vector<1x128xf32>
    %93 = vector.broadcast %86 : vector<1x128xf32> to vector<8x128xf32>
    %94 = arith.subf %77, %93 : vector<8x128xf32>
    %cst_41 = arith.constant 9.99999974E-6 : f32
    %95 = vector.broadcast %cst_41 : f32 to vector<1x128xf32>
    %96 = arith.addf %92, %95 : vector<1x128xf32>
    %97 = math.rsqrt %96 : vector<1x128xf32>
    %98 = vector.broadcast %97 : vector<1x128xf32> to vector<8x128xf32>
    %99 = arith.mulf %94, %98 : vector<8x128xf32>
    %100 = vector.broadcast %78 : vector<1x128xf32> to vector<8x128xf32>
    %101 = arith.mulf %99, %100 : vector<8x128xf32>
    %102 = vector.broadcast %79 : vector<1x128xf32> to vector<8x128xf32>
    %103 = arith.addf %101, %102 : vector<8x128xf32>
    %cst_42 = arith.constant 0.000000e+00 : f32
    %104 = vector.broadcast %cst_42 : f32 to vector<8x128xf32>
    %105 = arith.maximumf %103, %104 : vector<8x128xf32>
    %c3_43 = arith.constant 3 : index
    %c0_44 = arith.constant 0 : index
    %c0_45 = arith.constant 0 : index
    %106 = vector.load %arg1[%c3_43, %c0_44, %c0_45] : memref<5x128x128xbf16, #tpu.memory_space<vmem>>, vector<1x128x128xbf16>
    %107 = vector.shape_cast %106 : vector<1x128x128xbf16> to vector<128x128xbf16>
    %c9 = arith.constant 9 : index
    %c0_46 = arith.constant 0 : index
    %108 = vector.load %arg2[%c9, %c0_46] : memref<13x128xf32, #tpu.memory_space<vmem>>, vector<1x128xf32>
    %109 = arith.truncf %105 : vector<8x128xf32> to vector<8x128xbf16>
    %cst_47 = arith.constant dense<0.000000e+00> : vector<8x128xf32>
    %110 = tpu.matmul %109, %107, %cst_47 {dimension_numbers = #tpu.dot_dimension_numbers<[1], [0], [0], [1], [0, 0, 1, 1], [], []>} : vector<8x128xbf16>, vector<128x128xbf16>, vector<8x128xf32> -> vector<8x128xf32>
    %111 = vector.broadcast %108 : vector<1x128xf32> to vector<8x128xf32>
    %112 = arith.addf %110, %111 : vector<8x128xf32>
    %c10 = arith.constant 10 : index
    %c0_48 = arith.constant 0 : index
    %113 = vector.load %arg2[%c10, %c0_48] : memref<13x128xf32, #tpu.memory_space<vmem>>, vector<1x128xf32>
    %c11 = arith.constant 11 : index
    %c0_49 = arith.constant 0 : index
    %114 = vector.load %arg2[%c11, %c0_49] : memref<13x128xf32, #tpu.memory_space<vmem>>, vector<1x128xf32>
    %cst_50 = arith.constant dense<0.000000e+00> : vector<128xf32>
    %115 = vector.multi_reduction <add>, %112, %cst_50 [0] : vector<8x128xf32> to vector<128xf32>
    %116 = vector.shape_cast %115 : vector<128xf32> to vector<1x128xf32>
    %117 = arith.mulf %112, %112 : vector<8x128xf32>
    %cst_51 = arith.constant dense<0.000000e+00> : vector<128xf32>
    %118 = vector.multi_reduction <add>, %117, %cst_51 [0] : vector<8x128xf32> to vector<128xf32>
    %119 = vector.shape_cast %118 : vector<128xf32> to vector<1x128xf32>
    %cst_52 = arith.constant 1.250000e-01 : f32
    %120 = vector.broadcast %cst_52 : f32 to vector<1x128xf32>
    %121 = arith.mulf %116, %120 : vector<1x128xf32>
    %cst_53 = arith.constant 1.250000e-01 : f32
    %122 = vector.broadcast %cst_53 : f32 to vector<1x128xf32>
    %123 = arith.mulf %119, %122 : vector<1x128xf32>
    %124 = arith.mulf %121, %121 : vector<1x128xf32>
    %125 = arith.subf %123, %124 : vector<1x128xf32>
    %cst_54 = arith.constant 0.000000e+00 : f32
    %126 = vector.broadcast %cst_54 : f32 to vector<1x128xf32>
    %127 = arith.maximumf %125, %126 : vector<1x128xf32>
    %128 = vector.broadcast %121 : vector<1x128xf32> to vector<8x128xf32>
    %129 = arith.subf %112, %128 : vector<8x128xf32>
    %cst_55 = arith.constant 9.99999974E-6 : f32
    %130 = vector.broadcast %cst_55 : f32 to vector<1x128xf32>
    %131 = arith.addf %127, %130 : vector<1x128xf32>
    %132 = math.rsqrt %131 : vector<1x128xf32>
    %133 = vector.broadcast %132 : vector<1x128xf32> to vector<8x128xf32>
    %134 = arith.mulf %129, %133 : vector<8x128xf32>
    %135 = vector.broadcast %113 : vector<1x128xf32> to vector<8x128xf32>
    %136 = arith.mulf %134, %135 : vector<8x128xf32>
    %137 = vector.broadcast %114 : vector<1x128xf32> to vector<8x128xf32>
    %138 = arith.addf %136, %137 : vector<8x128xf32>
    %cst_56 = arith.constant 0.000000e+00 : f32
    %139 = vector.broadcast %cst_56 : f32 to vector<8x128xf32>
    %140 = arith.maximumf %138, %139 : vector<8x128xf32>
    %c4_57 = arith.constant 4 : index
    %c0_58 = arith.constant 0 : index
    %c0_59 = arith.constant 0 : index
    %141 = vector.load %arg1[%c4_57, %c0_58, %c0_59] : memref<5x128x128xbf16, #tpu.memory_space<vmem>>, vector<1x128x128xbf16>
    %142 = vector.shape_cast %141 : vector<1x128x128xbf16> to vector<128x128xbf16>
    %c12 = arith.constant 12 : index
    %c0_60 = arith.constant 0 : index
    %143 = vector.load %arg2[%c12, %c0_60] : memref<13x128xf32, #tpu.memory_space<vmem>>, vector<1x128xf32>
    %144 = arith.truncf %140 : vector<8x128xf32> to vector<8x128xbf16>
    %cst_61 = arith.constant dense<0.000000e+00> : vector<8x128xf32>
    %145 = tpu.matmul %144, %142, %cst_61 {dimension_numbers = #tpu.dot_dimension_numbers<[1], [0], [0], [1], [0, 0, 1, 1], [], []>} : vector<8x128xbf16>, vector<128x128xbf16>, vector<8x128xf32> -> vector<8x128xf32>
    %146 = vector.broadcast %143 : vector<1x128xf32> to vector<8x128xf32>
    %147 = arith.addf %145, %146 : vector<8x128xf32>
    %cst_62 = arith.constant dense<0xFF800000> : vector<8xf32>
    %148 = vector.multi_reduction <maximumf>, %147, %cst_62 [1] : vector<8x128xf32> to vector<8xf32>
    %149 = vector.shape_cast %148 : vector<8xf32> to vector<8x1xf32>
    %150 = vector.broadcast %149 : vector<8x1xf32> to vector<8x128xf32>
    %151 = arith.subf %147, %150 : vector<8x128xf32>
    %152 = math.exp %151 : vector<8x128xf32>
    %cst_63 = arith.constant dense<0.000000e+00> : vector<8xf32>
    %153 = vector.multi_reduction <add>, %152, %cst_63 [1] : vector<8x128xf32> to vector<8xf32>
    %154 = vector.shape_cast %153 : vector<8xf32> to vector<8x1xf32>
    %155 = tpu.reciprocal %154 : vector<8x1xf32> -> vector<8x1xf32>
    %156 = vector.broadcast %155 : vector<8x1xf32> to vector<8x128xf32>
    %157 = arith.mulf %152, %156 : vector<8x128xf32>
    %158 = tpu.transpose %157, [1, 0] : vector<8x128xf32> -> vector<128x8xf32>
    %159 = vector.extract_strided_slice %158 {offsets = [0, 0], sizes = [8, 8], strides = [1, 1]} : vector<128x8xf32> to vector<8x8xf32>
    %c0_64 = arith.constant 0 : index
    %c0_65 = arith.constant 0 : index
    %160 = vector.load %arg3[%c0_64, %c0_65] : memref<8x8xf32, #tpu.memory_space<vmem>>, vector<8x8xf32>
    tpu.vector_store %arg3[%c0_64, %c0_65], %159 {strides = array<i32>} : memref<8x8xf32, #tpu.memory_space<vmem>>, vector<8x8xf32>,
    return
  }
}

</mosaic_0001>

<bundles_post_ra>
// kernel: tpu_custom_call.1
= control target key start
LH: loop header
LB: loop body
LE: loop exit
PB: predicated region body
PF: predicated region fallthrough
CT: control target
= control target key end

     0   :  { %8 = vsyncpa [#allocation3], 0  ;;  %s1211_s0 = inlined_call_operand.hbm [shape: bf16[8,32], index: 0, kind: input, shape index: {}]   ;;  %s1212_s1 = inlined_call_operand.hbm [shape: bf16[5,128,128], index: 1, kind: input, shape index: {}]   ;;  %s1213_s2 = inlined_call_operand.hbm [shape: f32[13,128], index: 2, kind: input, shape index: {}]   ;;  %s1214_s3 = inlined_call_operand.hbm [shape: f32[8,8], index: 3, kind: output, shape index: {}]  }
   0x1   :  { %9 = vsyncpa [#allocation6], 0 }
   0x2   :  { %10 = vsyncpa [#allocation4], 0  ;;  %s1089_s12 = smov [#allocation5]   ;;  %s995_s16 = scalar_lea.hbm %s1212_s1, 5120 }
   0x3   :  { %s26_s13 = sshll.u32 %s1089_s12, 4  ;;  %p996_p0 = scmp.ne.s32.totalorder %s1212_s1, %s995_s16  ;;  %s27_s13 = int_to_ptr.vmem [resolvable:$true] %s26_s13 }
   0x4   :  { %p999_p1 = scmp.lt.u32.totalorder %s995_s16, %s1212_s1 }
   0x6   :  { %p1001_p2 = pnand %p999_p1, %p996_p0 }
   0x8   :  { %1004 = shalt.err (!%p1001_p2)
}
   0x9   :  { %s1005_s21 = scalar_lea.vmem %s27_s13, 5120  ;;  %p1010_p4 = scmp.lt.s32.totalorder %s27_s13, %s27_s13 }
   0xa   :  { %p1006_p3 = scmp.ne.s32.totalorder %s27_s13, %s1005_s21  ;;  %p1011_p5 = scmp.lt.s32.totalorder %s1005_s21, %s1005_s21 }
   0xc   :  { %p1012_p6 = por %p1011_p5, %p1010_p4 }
   0xe   :  { %p1013_p7 = pnand %p1012_p6, %p1006_p3 }
  0x10   :  { %1016 = shalt.err (!%p1013_p7)
}
  0x11   :  { %s1090_s22 = smov 64   ;;  %s1091_s23 = smov 4  }
  0x12   :  { %32 = dma.hbm_to_vmem [thread:$0]  %s1212_s1, 5120, %s27_s13, [#allocation6], %s1090_s22, %s1090_s22, %s1091_s23  }
  0x13   :  { %s1092_s26 = smov [#allocation2]   ;;  %s1093_s28 = smov [#allocation7]  }
  0x14   :  { %s17_s27 = sshll.u32 %s1092_s26, 4  ;;  %s38_s29 = sshll.u32 %s1093_s28, 4  ;;  %s18_s27 = int_to_ptr.vmem [resolvable:$true] %s17_s27  ;;  %s39_s29 = int_to_ptr.vmem [resolvable:$true] %s38_s29 }
  0x15   :  { %s1017_s5 = scalar_lea.hbm %s1211_s0, 64 }
  0x16   :  { %p1018_p8 = scmp.ne.s32.totalorder %s1211_s0, %s1017_s5  ;;  %p1021_p9 = scmp.lt.u32.totalorder %s1017_s5, %s1211_s0 }
  0x18   :  { %p1023_p10 = pnand %p1021_p9, %p1018_p8 }
  0x1a   :  { %1026 = shalt.err (!%p1023_p10)
}
  0x1b   :  { %s1027_s1 = scalar_lea.vmem %s18_s27, 64  ;;  %p1032_p12 = scmp.lt.s32.totalorder %s18_s27, %s18_s27 }
  0x1c   :  { %p1028_p11 = scmp.ne.s32.totalorder %s18_s27, %s1027_s1  ;;  %p1033_p13 = scmp.lt.s32.totalorder %s1027_s1, %s1027_s1 }
  0x1e   :  { %p1034_p0 = por %p1033_p13, %p1032_p12 }
  0x20   :  { %p1035_p1 = pnand %p1034_p0, %p1028_p11 }
  0x22   :  { %1038 = shalt.err (!%p1035_p1)
}
  0x23   :  { %20 = dma.hbm_to_vmem [thread:$0]  %s1211_s0, 64, %s18_s27, [#allocation3]  }
  0x24   :  { %s1039_s14 = scalar_lea.hbm %s1213_s2, 256 }
  0x25   :  { %p1040_p2 = scmp.ne.s32.totalorder %s1213_s2, %s1039_s14  ;;  %p1043_p3 = scmp.lt.u32.totalorder %s1039_s14, %s1213_s2 }
  0x27   :  { %p1045_p4 = pnand %p1043_p3, %p1040_p2 }
  0x29   :  { %1048 = shalt.err (!%p1045_p4)
}
  0x2a   :  { %s1049_s19 = scalar_lea.vmem %s39_s29, 256  ;;  %p1054_p6 = scmp.lt.s32.totalorder %s39_s29, %s39_s29 }
  0x2b   :  { %p1050_p5 = scmp.ne.s32.totalorder %s39_s29, %s1049_s19  ;;  %p1055_p7 = scmp.lt.s32.totalorder %s1049_s19, %s1049_s19 }
  0x2d   :  { %p1056_p8 = por %p1055_p7, %p1054_p6 }
  0x2f   :  { %p1057_p9 = pnand %p1056_p8, %p1050_p5 }
  0x31   :  { %1060 = shalt.err (!%p1057_p9)
}
  0x32   :  { %s1094_s0 = smov 128   ;;  %s1095_s20 = smov 8  }
  0x33   :  { %44 = dma.hbm_to_vmem [thread:$0]  %s1213_s2, 256, %s39_s29, [#allocation6], %s1094_s0, %s1094_s0, %s1095_s20  }
  0x34   :  { %1083 = dma.done.wait [#allocation3], 64  }
  0x35   :  { %1084 = vsyncadd [#allocation3], 4294967232 }
  0x36   :  { %1085 = dma.done.wait [#allocation6], 5376  }
  0x37   :  { %1086 = vsyncadd [#allocation6], 4294961920  ;;  %v1096_v0 = vmov 0.0   ;;  %vm1097_vm0 = vmmov 0   ;;  %v949_v1 = vld [vmem:[#allocation5] sm:$0xff]   ;;  %v950_v2 = vld [vmem:[#allocation5 + $0x8] sm:$0xff]  }
  0x38   :  { %851 = vmatprep.subr.bf16.mxu0 %v1096_v0  ;;  %855 = vmatprep.mubr.msk.bf16.mxu0 %vm1097_vm0, %v1096_v0  ;;  %vm77_vm1 = vcmask 261120   ;;  %v59_v3 = vld [vmem:[#allocation2] sm:$0xf]  ;;  %v951_v4 = vld [vmem:[#allocation5 + $0x40] sm:$0xff]   ;;  %v952_v5 = vld [vmem:[#allocation5 + $0x48] sm:$0xff]   ;;  %s1098_s2 = smov [#allocation8]  }
  0x39   :  { %859 = vmatprep.subr.bf16.mxu1 %v1096_v0  ;;  %875 = vmatprep.mubr.msk.bf16.mxu1 %vm1097_vm0, %v1096_v0  ;;  %v953_v6 = vld [vmem:[#allocation5 + $0x50] sm:$0xff]   ;;  %v954_v7 = vld [vmem:[#allocation5 + $0x58] sm:$0xff]   ;;  %v955_v8 = vld [vmem:[#allocation5 + $0x60] sm:$0xff]   ;;  %s754_s23 = sshll.u32 %s1098_s2, 4  ;;  %vm746_vm2 = vcmask 64512   ;;  %s755_s23 = int_to_ptr.vmem [resolvable:$true] %s754_s23 }
  0x3a   :  { %852 = vmatpush3.bf16.msra.mxu0 %v949_v1  ;;  %860 = vmatpush3.bf16.msra.mxu1 %v951_v4  ;;  %v956_v9 = vld [vmem:[#allocation5 + $0x68] sm:$0xff]   ;;  %v957_v10 = vld [vmem:[#allocation5 + $0x70] sm:$0xff]   ;;  %v958_v11 = vld [vmem:[#allocation5 + $0x78] sm:$0xff]   ;;  %s1061_s24 = scalar_lea.vmem %s755_s23, 128  ;;  %p1066_p11 = scmp.lt.s32.totalorder %s755_s23, %s755_s23 }
  0x3b   :  { %853 = vmatprep.subr.bf16.mxu0 %v1096_v0  ;;  %861 = vmatprep.subr.bf16.mxu1 %v1096_v0  ;;  %v764_v12 = vld [vmem:[#allocation7] ss:$0 sm:$0xff]  ;;  %v768_v39 = vld [vmem:[#allocation7 + $0x1] ss:$0 sm:$0xff]  ;;  %v769_v41 = vld [vmem:[#allocation7 + $0x2] ss:$0 sm:$0xff]  ;;  %p1062_p10 = scmp.ne.s32.totalorder %s755_s23, %s1061_s24  ;;  %p1067_p12 = scmp.lt.s32.totalorder %s1061_s24, %s1061_s24 }
  0x3c   :  { %v959_v46 = vld [vmem:[#allocation5 + $0x80] sm:$0xff]   ;;  %v960_v47 = vld [vmem:[#allocation5 + $0x88] sm:$0xff]   ;;  %v961_v48 = vld [vmem:[#allocation5 + $0x90] sm:$0xff]  }
  0x3d   :  { %v962_v49 = vld [vmem:[#allocation5 + $0x98] sm:$0xff]   ;;  %v963_v50 = vld [vmem:[#allocation5 + $0xa0] sm:$0xff]   ;;  %v964_v51 = vld [vmem:[#allocation5 + $0xa8] sm:$0xff]   ;;  %p1068_p13 = por %p1067_p12, %p1066_p11 }
  0x3e   :  { %854 = vmatpush3.bf16.msra.mxu0 %v950_v2  ;;  %862 = vmatpush3.bf16.msra.mxu1 %v952_v5  ;;  %v965_v52 = vld [vmem:[#allocation5 + $0xb0] sm:$0xff]   ;;  %v966_v53 = vld [vmem:[#allocation5 + $0xb8] sm:$0xff]   ;;  %v770_v54 = vld [vmem:[#allocation7 + $0x3] ss:$0 sm:$0xff] }
  0x3f   :  { %879 = vmatprep.subr.bf16.mxu0 %v1096_v0  ;;  %863 = vmatprep.subr.bf16.mxu1 %v1096_v0  ;;  %p1069_p0 = pnand %p1068_p13, %p1062_p10 }
  0x41   :  { %856 = vmatmul.mubr.msk.bf16.vlgmr.msra.gmra.mrb[0].mxu0 %vm77_vm1, %v59_v3 }
  0x42   :  { %895 = vmatprep.mubr.msk.bf16.mxu0 %vm1097_vm0, %v1096_v0  ;;  %864 = vmatpush3.bf16.msra.mxu1 %v953_v6 }
  0x43   :  { %865 = vmatprep.subr.bf16.mxu1 %v1096_v0  ;;  %880 = vmatpush3.bf16.msra.mxu0 %v959_v46 }
  0x44   :  { %881 = vmatprep.subr.bf16.mxu0 %v1096_v0 }
  0x46   :  { %866 = vmatpush3.bf16.msra.mxu1 %v954_v7 }
  0x47   :  { %867 = vmatprep.subr.bf16.mxu1 %v1096_v0  ;;  %882 = vmatpush3.bf16.msra.mxu0 %v960_v47 }
  0x48   :  { %883 = vmatprep.subr.bf16.mxu0 %v1096_v0 }
  0x4a   :  { %868 = vmatpush3.bf16.msra.mxu1 %v955_v8 }
  0x4b   :  { %869 = vmatprep.subr.bf16.mxu1 %v1096_v0  ;;  %884 = vmatpush3.bf16.msra.mxu0 %v961_v48 }
  0x4c   :  { %885 = vmatprep.subr.bf16.mxu0 %v1096_v0 }
  0x4e   :  { %870 = vmatpush3.bf16.msra.mxu1 %v956_v9 }
  0x4f   :  { %871 = vmatprep.subr.bf16.mxu1 %v1096_v0  ;;  %886 = vmatpush3.bf16.msra.mxu0 %v962_v49 }
  0x50   :  { %887 = vmatprep.subr.bf16.mxu0 %v1096_v0 }
  0x52   :  { %872 = vmatpush3.bf16.msra.mxu1 %v957_v10 }
  0x53   :  { %873 = vmatprep.subr.bf16.mxu1 %v1096_v0  ;;  %888 = vmatpush3.bf16.msra.mxu0 %v963_v50 }
  0x54   :  { %889 = vmatprep.subr.bf16.mxu0 %v1096_v0 }
  0x56   :  { %874 = vmatpush3.bf16.msra.mxu1 %v958_v11 }
  0x57   :  { %899 = vmatprep.subr.bf16.mxu1 %v1096_v0  ;;  %890 = vmatpush3.bf16.msra.mxu0 %v964_v51 }
  0x58   :  { %891 = vmatprep.subr.bf16.mxu0 %v1096_v0 }
  0x5b   :  { %892 = vmatpush3.bf16.msra.mxu0 %v965_v52 }
  0x5c   :  { %893 = vmatprep.subr.bf16.mxu0 %v1096_v0 }
  0x5f   :  { %894 = vmatpush3.bf16.msra.mxu0 %v966_v53 }
  0x60   :  { %919 = vmatprep.subr.bf16.mxu0 %v1096_v0 }
 0x114   :  { %v115_v13 = vpop.f32.mrb[0].mxu0 }
 0x115   :  { %v116_v14 = vadd.f32 %v764_v12, %v115_v13  ;;  %v857_v15 = vpop.f32.mrb[1].mxu0 }
 0x116   :  { %v118_v16 = vpop.f32.mrb[2].mxu0 }
 0x117   :  { %v123_v17 = vrot.slane %v116_v14, 4  ;;  %v129_v18 = vmul.f32 %v116_v14, %v116_v14  ;;  %v858_v19 = vpop.f32.mrb[3].mxu0 }
 0x119   :  { %v124_v20 = vadd.f32 %v123_v17, %v116_v14  ;;  %v130_v21 = vrot.slane %v129_v18, 4 }
 0x11b   :  { %v125_v22 = vrot.slane %v124_v20, 2  ;;  %v131_v23 = vadd.f32 %v130_v21, %v129_v18  ;;  %v779_v18 = vld [vmem:[#allocation7 + $0x4] ss:$0 sm:$0xff] }
 0x11d   :  { %v126_v24 = vadd.f32 %v125_v22, %v124_v20  ;;  %v132_v25 = vrot.slane %v131_v23, 2  ;;  %v780_v20 = vld [vmem:[#allocation7 + $0x5] ss:$0 sm:$0xff] }
 0x11f   :  { %v127_v26 = vrot.slane %v126_v24, 1  ;;  %v133_v27 = vadd.f32 %v132_v25, %v131_v23  ;;  %v967_v25 = vld [vmem:[#allocation5 + $0xc0] sm:$0xff]  }
 0x121   :  { %v128_v28 = vadd.f32 %v127_v26, %v126_v24  ;;  %v134_v29 = vrot.slane %v133_v27, 1  ;;  %v968_v26 = vld [vmem:[#allocation5 + $0xc8] sm:$0xff]  }
 0x123   :  { %v135_v30 = vadd.f32 %v134_v29, %v133_v27  ;;  %v136_v31 = vmul.f32 0.125, %v128_v28  ;;  %v969_v27 = vld [vmem:[#allocation5 + $0xd0] sm:$0xff]   ;;  %v970_v28 = vld [vmem:[#allocation5 + $0xd8] sm:$0xff]   ;;  %v971_v29 = vld [vmem:[#allocation5 + $0xe0] sm:$0xff]  }
 0x125   :  { %v137_v32 = vmul.f32 0.125, %v135_v30  ;;  %v138_v33 = vmul.f32 %v136_v31, %v136_v31  ;;  %v141_v37 = vsub.f32 %v116_v14, %v136_v31  ;;  %v972_v30 = vld [vmem:[#allocation5 + $0xe8] sm:$0xff]   ;;  %v973_v31 = vld [vmem:[#allocation5 + $0xf0] sm:$0xff]  }
 0x127   :  { %v139_v34 = vsub.f32 %v137_v32, %v138_v33  ;;  %v974_v32 = vld [vmem:[#allocation5 + $0xf8] sm:$0xff]   ;;  %v781_v33 = vld [vmem:[#allocation7 + $0x6] ss:$0 sm:$0xff] }
 0x129   :  { %v140_v35 = vmax.f32 %v139_v34, 0.0 }
 0x12b   :  { %v142_v36 = vadd.f32 1e-05, %v140_v35 }
 0x12d   :  { %983 = vrsqrt.f32 %v142_v36 }
 0x137   :  { %v984_v38 = vpop.eup %983 }
 0x138   :  { %v144_v40 = vmul.f32 %v984_v38, %v141_v37 }
 0x13a   :  { %v149_v42 = vmul.f32 %v768_v39, %v144_v40 }
 0x13c   :  { %v154_v43 = vadd.f32 %v769_v41, %v149_v42 }
 0x13e   :  { %v155_v44 = vmax.f32 %v154_v43, 0.0 }
 0x140   :  { %v174_v45 = vpack.c.bf16 %v155_v44, %v155_v44 }
 0x142   :  { %876 = vmatmul.mubr.bf16.vlgmr.msra.gmra.mrb[0].mxu1 %v174_v45 }
 0x143   :  { %915 = vmatprep.mubr.msk.bf16.mxu1 %vm1097_vm0, %v1096_v0  ;;  %900 = vmatpush3.bf16.msra.mxu1 %v967_v25 }
 0x144   :  { %901 = vmatprep.subr.bf16.mxu1 %v1096_v0 }
 0x147   :  { %902 = vmatpush3.bf16.msra.mxu1 %v968_v26 }
 0x148   :  { %903 = vmatprep.subr.bf16.mxu1 %v1096_v0 }
 0x14b   :  { %904 = vmatpush3.bf16.msra.mxu1 %v969_v27 }
 0x14c   :  { %905 = vmatprep.subr.bf16.mxu1 %v1096_v0 }
 0x14f   :  { %906 = vmatpush3.bf16.msra.mxu1 %v970_v28 }
 0x150   :  { %907 = vmatprep.subr.bf16.mxu1 %v1096_v0 }
 0x153   :  { %908 = vmatpush3.bf16.msra.mxu1 %v971_v29 }
 0x154   :  { %909 = vmatprep.subr.bf16.mxu1 %v1096_v0 }
 0x157   :  { %910 = vmatpush3.bf16.msra.mxu1 %v972_v30 }
 0x158   :  { %911 = vmatprep.subr.bf16.mxu1 %v1096_v0 }
 0x15b   :  { %912 = vmatpush3.bf16.msra.mxu1 %v973_v31 }
 0x15c   :  { %913 = vmatprep.subr.bf16.mxu1 %v1096_v0 }
 0x15f   :  { %914 = vmatpush3.bf16.msra.mxu1 %v974_v32 }
 0x215   :  { %v261_v55 = vpop.f32.mrb[0].mxu1 }
 0x216   :  { %v262_v56 = vadd.f32 %v770_v54, %v261_v55  ;;  %v877_v57 = vpop.f32.mrb[1].mxu1 }
 0x217   :  { %v264_v58 = vpop.f32.mrb[2].mxu1 }
 0x218   :  { %v269_v59 = vrot.slane %v262_v56, 4  ;;  %v275_v60 = vmul.f32 %v262_v56, %v262_v56  ;;  %v878_v61 = vpop.f32.mrb[3].mxu1 }
 0x21a   :  { %v270_v62 = vadd.f32 %v269_v59, %v262_v56  ;;  %v276_v63 = vrot.slane %v275_v60, 4 }
 0x21c   :  { %v271_v1 = vrot.slane %v270_v62, 2  ;;  %v277_v2 = vadd.f32 %v276_v63, %v275_v60  ;;  %v790_v60 = vld [vmem:[#allocation7 + $0x7] ss:$0 sm:$0xff] }
 0x21e   :  { %v272_v3 = vadd.f32 %v271_v1, %v270_v62  ;;  %v278_v4 = vrot.slane %v277_v2, 2  ;;  %v791_v62 = vld [vmem:[#allocation7 + $0x8] ss:$0 sm:$0xff] }
 0x220   :  { %v273_v5 = vrot.slane %v272_v3, 1  ;;  %v279_v6 = vadd.f32 %v278_v4, %v277_v2  ;;  %v975_v4 = vld [vmem:[#allocation5 + $0x100] sm:$0xff]  }
 0x222   :  { %v274_v7 = vadd.f32 %v273_v5, %v272_v3  ;;  %v280_v8 = vrot.slane %v279_v6, 1  ;;  %v976_v5 = vld [vmem:[#allocation5 + $0x108] sm:$0xff]  }
 0x224   :  { %v281_v9 = vadd.f32 %v280_v8, %v279_v6  ;;  %v282_v10 = vmul.f32 0.125, %v274_v7  ;;  %v977_v6 = vld [vmem:[#allocation5 + $0x110] sm:$0xff]   ;;  %v978_v7 = vld [vmem:[#allocation5 + $0x118] sm:$0xff]   ;;  %v979_v8 = vld [vmem:[#allocation5 + $0x120] sm:$0xff]  }
 0x226   :  { %v283_v11 = vmul.f32 0.125, %v281_v9  ;;  %v284_v12 = vmul.f32 %v282_v10, %v282_v10  ;;  %v287_v16 = vsub.f32 %v262_v56, %v282_v10  ;;  %v980_v9 = vld [vmem:[#allocation5 + $0x128] sm:$0xff]   ;;  %v981_v10 = vld [vmem:[#allocation5 + $0x130] sm:$0xff]  }
 0x228   :  { %v285_v13 = vsub.f32 %v283_v11, %v284_v12  ;;  %v982_v11 = vld [vmem:[#allocation5 + $0x138] sm:$0xff]   ;;  %v792_v12 = vld [vmem:[#allocation7 + $0x9] ss:$0 sm:$0xff] }
 0x22a   :  { %v286_v14 = vmax.f32 %v285_v13, 0.0 }
 0x22c   :  { %v288_v15 = vadd.f32 1e-05, %v286_v14 }
 0x22e   :  { %985 = vrsqrt.f32 %v288_v15 }
 0x238   :  { %v986_v17 = vpop.eup %985 }
 0x239   :  { %v290_v19 = vmul.f32 %v986_v17, %v287_v16 }
 0x23b   :  { %v295_v21 = vmul.f32 %v779_v18, %v290_v19 }
 0x23d   :  { %v300_v22 = vadd.f32 %v780_v20, %v295_v21 }
 0x23f   :  { %v301_v23 = vmax.f32 %v300_v22, 0.0 }
 0x241   :  { %v320_v24 = vpack.c.bf16 %v301_v23, %v301_v23 }
 0x243   :  { %896 = vmatmul.mubr.bf16.vlgmr.msra.gmra.mrb[4].mxu0 %v320_v24 }
 0x244   :  { %935 = vmatprep.mubr.msk.bf16.mxu0 %vm1097_vm0, %v1096_v0  ;;  %920 = vmatpush3.bf16.msra.mxu0 %v975_v4 }
 0x245   :  { %921 = vmatprep.subr.bf16.mxu0 %v1096_v0 }
 0x248   :  { %922 = vmatpush3.bf16.msra.mxu0 %v976_v5 }
 0x249   :  { %923 = vmatprep.subr.bf16.mxu0 %v1096_v0 }
 0x24c   :  { %924 = vmatpush3.bf16.msra.mxu0 %v977_v6 }
 0x24d   :  { %925 = vmatprep.subr.bf16.mxu0 %v1096_v0 }
 0x250   :  { %926 = vmatpush3.bf16.msra.mxu0 %v978_v7 }
 0x251   :  { %927 = vmatprep.subr.bf16.mxu0 %v1096_v0 }
 0x254   :  { %928 = vmatpush3.bf16.msra.mxu0 %v979_v8 }
 0x255   :  { %929 = vmatprep.subr.bf16.mxu0 %v1096_v0 }
 0x258   :  { %930 = vmatpush3.bf16.msra.mxu0 %v980_v9 }
 0x259   :  { %931 = vmatprep.subr.bf16.mxu0 %v1096_v0 }
 0x25c   :  { %932 = vmatpush3.bf16.msra.mxu0 %v981_v10 }
 0x25d   :  { %933 = vmatprep.subr.bf16.mxu0 %v1096_v0 }
 0x260   :  { %934 = vmatpush3.bf16.msra.mxu0 %v982_v11 }
 0x316   :  { %v407_v34 = vpop.f32.mrb[4].mxu0 }
 0x317   :  { %v408_v35 = vadd.f32 %v781_v33, %v407_v34  ;;  %v897_v36 = vpop.f32.mrb[5].mxu0 }
 0x318   :  { %v410_v37 = vpop.f32.mrb[6].mxu0 }
 0x319   :  { %v415_v38 = vrot.slane %v408_v35, 4  ;;  %v421_v39 = vmul.f32 %v408_v35, %v408_v35  ;;  %v898_v40 = vpop.f32.mrb[7].mxu0 }
 0x31a   :  { %v802_v40 = vld [vmem:[#allocation7 + $0xb] ss:$0 sm:$0xff] }
 0x31b   :  { %v416_v41 = vadd.f32 %v415_v38, %v408_v35  ;;  %v422_v42 = vrot.slane %v421_v39, 4  ;;  %v801_v38 = vld [vmem:[#allocation7 + $0xa] ss:$0 sm:$0xff] }
 0x31d   :  { %v417_v43 = vrot.slane %v416_v41, 2  ;;  %v423_v44 = vadd.f32 %v422_v42, %v421_v39 }
 0x31f   :  { %v418_v45 = vadd.f32 %v417_v43, %v416_v41  ;;  %v424_v46 = vrot.slane %v423_v44, 2 }
 0x321   :  { %v419_v47 = vrot.slane %v418_v45, 1  ;;  %v425_v48 = vadd.f32 %v424_v46, %v423_v44 }
 0x323   :  { %v420_v49 = vadd.f32 %v419_v47, %v418_v45  ;;  %v426_v50 = vrot.slane %v425_v48, 1  ;;  %v803_v45 = vld [vmem:[#allocation7 + $0xc] ss:$0 sm:$0xff] }
 0x325   :  { %v427_v51 = vadd.f32 %v426_v50, %v425_v48  ;;  %v428_v52 = vmul.f32 0.125, %v420_v49 }
 0x327   :  { %v429_v53 = vmul.f32 0.125, %v427_v51  ;;  %v430_v54 = vmul.f32 %v428_v52, %v428_v52  ;;  %v433_v58 = vsub.f32 %v408_v35, %v428_v52 }
 0x329   :  { %v431_v55 = vsub.f32 %v429_v53, %v430_v54 }
 0x32b   :  { %v432_v56 = vmax.f32 %v431_v55, 0.0 }
 0x32d   :  { %v434_v57 = vadd.f32 1e-05, %v432_v56 }
 0x32f   :  { %987 = vrsqrt.f32 %v434_v57 }
 0x339   :  { %v988_v59 = vpop.eup %987 }
 0x33a   :  { %v436_v61 = vmul.f32 %v988_v59, %v433_v58 }
 0x33c   :  { %v441_v63 = vmul.f32 %v790_v60, %v436_v61 }
 0x33e   :  { %v446_v1 = vadd.f32 %v791_v62, %v441_v63 }
 0x340   :  { %v447_v2 = vmax.f32 %v446_v1, 0.0 }
 0x342   :  { %v466_v3 = vpack.c.bf16 %v447_v2, %v447_v2 }
 0x344   :  { %916 = vmatmul.mubr.bf16.vlgmr.msra.gmra.mrb[4].mxu1 %v466_v3 }
 0x417   :  { %v553_v13 = vpop.f32.mrb[4].mxu1 }
 0x418   :  { %v554_v14 = vadd.f32 %v792_v12, %v553_v13  ;;  %v917_v15 = vpop.f32.mrb[5].mxu1 }
 0x419   :  { %v556_v16 = vpop.f32.mrb[6].mxu1 }
 0x41a   :  { %v561_v17 = vrot.slane %v554_v14, 4  ;;  %v567_v18 = vmul.f32 %v554_v14, %v554_v14  ;;  %v918_v19 = vpop.f32.mrb[7].mxu1 }
 0x41c   :  { %v562_v20 = vadd.f32 %v561_v17, %v554_v14  ;;  %v568_v21 = vrot.slane %v567_v18, 4 }
 0x41e   :  { %v563_v22 = vrot.slane %v562_v20, 2  ;;  %v569_v23 = vadd.f32 %v568_v21, %v567_v18 }
 0x420   :  { %v564_v24 = vadd.f32 %v563_v22, %v562_v20  ;;  %v570_v25 = vrot.slane %v569_v23, 2 }
 0x422   :  { %v565_v26 = vrot.slane %v564_v24, 1  ;;  %v571_v27 = vadd.f32 %v570_v25, %v569_v23 }
 0x424   :  { %v566_v28 = vadd.f32 %v565_v26, %v564_v24  ;;  %v572_v29 = vrot.slane %v571_v27, 1 }
 0x426   :  { %v573_v0 = vadd.f32 %v572_v29, %v571_v27  ;;  %v574_v30 = vmul.f32 0.125, %v566_v28 }
 0x428   :  { %v575_v31 = vmul.f32 0.125, %v573_v0  ;;  %v576_v32 = vmul.f32 %v574_v30, %v574_v30  ;;  %v579_v36 = vsub.f32 %v554_v14, %v574_v30 }
 0x42a   :  { %v577_v33 = vsub.f32 %v575_v31, %v576_v32 }
 0x42c   :  { %v578_v34 = vmax.f32 %v577_v33, 0.0 }
 0x42e   :  { %v580_v35 = vadd.f32 1e-05, %v578_v34 }
 0x430   :  { %989 = vrsqrt.f32 %v580_v35 }
 0x43a   :  { %v990_v37 = vpop.eup %989 }
 0x43b   :  { %v582_v39 = vmul.f32 %v990_v37, %v579_v36 }
 0x43d   :  { %v587_v41 = vmul.f32 %v801_v38, %v582_v39 }
 0x43f   :  { %v592_v42 = vadd.f32 %v802_v40, %v587_v41 }
 0x441   :  { %v593_v43 = vmax.f32 %v592_v42, 0.0 }
 0x443   :  { %v612_v44 = vpack.c.bf16 %v593_v43, %v593_v43 }
 0x445   :  { %936 = vmatmul.mubr.bf16.vlgmr.msra.gmra.mrb[8].mxu0 %v612_v44 }
 0x518   :  { %v699_v46 = vpop.f32.mrb[8].mxu0 }
 0x519   :  { %v700_v47 = vadd.f32 %v803_v45, %v699_v46  ;;  %v937_v48 = vpop.f32.mrb[9].mxu0 }
 0x51a   :  { %v702_v49 = vpop.f32.mrb[10].mxu0 }
 0x51b   :  { %705 = vmax.xlane.f32.xlu0 %v700_v47  ;;  %v938_v50 = vpop.f32.mrb[11].mxu0 }
 0x5a8   :  { %v706_v51 = vpop.xlane.xlu0 %705 }
 0x5a9   :  { %v707_v52 = vsub.f32 %v700_v47, %v706_v51 }
 0x5ab   :  { %v708_v53 = vmul.f32 1.442695, %v707_v52 }
 0x5ad   :  { %991 = vpow2.f32 %v708_v53 }
 0x5b7   :  { %v992_v54 = vpop.eup %991 }
 0x5b8   :  { %710 = vadd.xlane.f32.xlu0 %v992_v54 }
 0x645   :  { %v711_v55 = vpop.xlane.xlu0 %710 }
 0x646   :  { %993 = vrcp.f32 %v711_v55 }
 0x650   :  { %v994_v56 = vpop.eup %993 }
 0x651   :  { %v713_v57 = vmul.f32 %v994_v56, %v992_v54 }
 0x653   :  { %714 = vxpose.xlu1.b32.start.end [1/1] (short) (narrow) %v713_v57, 8 }
 0x6d3   :  { %v730_v58 = vpop.trf.xlu1 }
 0x6d4   :  { %747 = vst.msk [vmem:[#allocation8] sm:$0xff] %vm746_vm2, %v730_v58 }
 0x6d5   :  { %1072 = shalt.err (!%p1069_p0)
}
 0x6d6   :  { %s1073_s27 = scalar_lea.hbm %s1214_s3, 128 }
 0x6d7   :  { %p1074_p1 = scmp.ne.s32.totalorder %s1214_s3, %s1073_s27  ;;  %p1077_p2 = scmp.lt.u32.totalorder %s1073_s27, %s1214_s3 }
 0x6d9   :  { %p1079_p3 = pnand %p1077_p2, %p1074_p1 }
 0x6db   :  { %1082 = shalt.err (!%p1079_p3)
}
 0x6dc   :  { %757 = dma.vmem_to_hbm [thread:$0]  %s755_s23, 128, %s1214_s3, [#allocation4]  }
 0x6dd   :  { %1087 = dma.done.wait [#allocation4], 128  }
 0x6de   :  { %1088 = vsyncadd [#allocation4], 4294967168 }
 0x6df   :  { %761 = vsyncpa [#allocation3], 1 }
 0x6e0   :  { %762 = vsyncpa [#allocation6], 1 }
 0x6e1   :  { %763 = vsyncpa [#allocation4], 1 }

</bundles_post_ra>
